<compile_context>
chip_gen: v7x
topology: tpu7x:2x2x1
jax: 0.10.0
libtpu: 0.0.40
codegen_flags: <defaults>
</compile_context>

<pallas_src>
import jax
import jax.numpy as jnp
from jax.experimental import pallas as pl
from jax.experimental.pallas import tpu as pltpu


def _round_up(n, m):
    return ((n + m - 1) // m) * m


def _poisson_noise_kernel(x_ref, n_ref, o_ref):
    # x_ref: (TB, C, ...), n_ref: (TB, 1, ...) -> noise broadcasts over channels.
    x = x_ref[...].astype(jnp.float32)
    n = n_ref[...].astype(jnp.float32)
    o_ref[...] = (x + jnp.sqrt(x) * n).astype(o_ref.dtype)


def _tpu_vmem_capacity_bytes():
    try:
        info = pltpu.get_tpu_info()
        cap = getattr(info, "vmem_capacity_bytes", None)
        if cap:
            return int(cap)
    except Exception:
        pass
    return 128 << 20  # conservative default (v5e/v6e-class)


def _generation_params():
    """(per-block byte cap, scoped-VMEM limit) sized per TPU generation."""
    vmem_phys = _tpu_vmem_capacity_bytes()
    if vmem_phys <= (64 << 20):
        # v7x-class: 64 MiB physical VMEM/TC but ~3.2 TB/s HBM -> bigger steps
        # so the ~0.35 us per-step overhead stays amortized.
        return 4 << 20, 40 << 20
    # v5e / v6e-class: 128 MiB physical VMEM, <= ~1.4 TB/s HBM.
    return 3 << 20, 48 << 20


def _plan_flat(B, C, hw, itemsize, cap):
    """Block plan for x viewed as (B, C, hw): returns (TB, tile_l)."""
    c_pad = _round_up(C, 8)  # sublane padding of the channel axis
    max_lanes = max(128, (cap // (c_pad * itemsize)) // 128 * 128)
    tile_l = hw if hw <= max_lanes else max_lanes
    blk = c_pad * _round_up(tile_l, 128) * itemsize
    tb = max(1, min(B, cap // max(blk, 1)))
    # Keep at least two grid steps when possible (v7x shards "parallel"
    # grid axes across its two TensorCores).
    if tb >= B and B > 1 and pl.cdiv(hw, tile_l) == 1:
        tb = (B + 1) // 2
    return tb, tile_l


def _plan_tiled(B, C, R, itemsize, cap):
    """Block plan for x viewed as (B, C, R, 128): returns (TB, S). Needs R >= 8."""
    row_bytes = C * 128 * itemsize
    max_rows = max(8, (cap // row_bytes) // 8 * 8)  # multiple of 8 -> full tiles
    s = R if R <= max_rows else max_rows
    blk = C * _round_up(s, 8) * 128 * itemsize
    tb = max(1, min(B, cap // max(blk, 1)))
    if tb >= B and B > 1 and pl.cdiv(R, s) == 1:
        tb = (B + 1) // 2
    return tb, s


def apply_poisson_noise(x, noise):
    """x: (B, C, H, W); noise: (B, 1, H, W) standard-normal draws (f32)."""
    B, C, H, W = x.shape
    assert noise.shape == (B, 1, H, W)
    hw = H * W
    itemsize = jnp.dtype(x.dtype).itemsize
    cap, vmem_limit = _generation_params()

    cparams = pltpu.CompilerParams(
        dimension_semantics=("parallel", "parallel"),
        vmem_limit_bytes=vmem_limit,
    )

    if hw % 128 == 0 and hw // 128 >= 8:
        # Sublane-full path: view the image plane as (R, 128) so blocks fill
        # native (8, 128) f32 tiles exactly.
        R = hw // 128
        tb, s = _plan_tiled(B, C, R, itemsize, cap)
        x4 = x.reshape(B, C, R, 128)          # contiguous, metadata-only
        n4 = noise.reshape(B, 1, R, 128)
        grid = (pl.cdiv(B, tb), pl.cdiv(R, s))
        out = pl.pallas_call(
            _poisson_noise_kernel,
            out_shape=jax.ShapeDtypeStruct((B, C, R, 128), x.dtype),
            grid=grid,
            in_specs=[
                pl.BlockSpec((tb, C, s, 128), lambda b, r: (b, 0, r, 0)),
                pl.BlockSpec((tb, 1, s, 128), lambda b, r: (b, 0, r, 0)),
            ],
            out_specs=pl.BlockSpec((tb, C, s, 128), lambda b, r: (b, 0, r, 0)),
            compiler_params=cparams,
        )(x4, n4)
    else:
        # Small / ragged image plane: flatten to (B, C, hw); lanes carry the
        # plane, sublanes carry C; batch-block to keep multi-MiB grid steps.
        tb, tile_l = _plan_flat(B, C, hw, itemsize, cap)
        x3 = x.reshape(B, C, hw)
        n3 = noise.reshape(B, 1, hw)
        grid = (pl.cdiv(B, tb), pl.cdiv(hw, tile_l))
        out = pl.pallas_call(
            _poisson_noise_kernel,
            out_shape=jax.ShapeDtypeStruct((B, C, hw), x.dtype),
            grid=grid,
            in_specs=[
                pl.BlockSpec((tb, C, tile_l), lambda b, l: (b, 0, l)),
                pl.BlockSpec((tb, 1, tile_l), lambda b, l: (b, 0, l)),
            ],
            out_specs=pl.BlockSpec((tb, C, tile_l), lambda b, l: (b, 0, l)),
            compiler_params=cparams,
        )(x3, n3)

    return out.reshape(B, C, H, W)


def poisson_noise_approx(x, key):
    """Matches poisson_noise_approx.forward: one N(0,1) plane per batch element,
    broadcast across channels: out = x + sqrt(x) * noise."""
    B, C, H, W = x.shape
    noise = jax.random.normal(key, (B, 1, H, W), dtype=jnp.float32)
    # TODO(synk): noise could be drawn in-kernel (pltpu.prng_seed + stateful_normal)
    # to save its HBM round-trip, but it would not bit-match jax.random.normal.
    return apply_poisson_noise(x, noise)


def _reference(x, noise):
    xf = x.astype(jnp.float32)
    nf = noise.astype(jnp.float32)
    return (xf + jnp.sqrt(xf) * nf).astype(x.dtype)


if __name__ == "__main__":
    key = jax.random.PRNGKey(0)
    k_data, k_noise, k_data2, k_noise2 = jax.random.split(key, 4)

    # Shape implied by the module's forward (flat path: hw = 256).
    B, C, H, W = 2, 4, 16, 16
    x = jax.random.uniform(k_data, (B, C, H, W), dtype=jnp.float32,
                           minval=0.0, maxval=100.0)
    noise = jax.random.normal(k_noise, (B, 1, H, W), dtype=jnp.float32)
    out = jax.block_until_ready(apply_poisson_noise(x, noise))
    ref = _reference(x, noise)
    assert out.shape == x.shape and out.dtype == x.dtype
    assert jnp.allclose(out, ref, atol=1e-5, rtol=1e-5)

    # Also exercise the sublane-full tiled path (hw = 1024 -> R = 8).
    B2, C2, H2, W2 = 2, 4, 32, 32
    x2 = jax.random.uniform(k_data2, (B2, C2, H2, W2), dtype=jnp.float32,
                            minval=0.0, maxval=100.0)
    noise2 = jax.random.normal(k_noise2, (B2, 1, H2, W2), dtype=jnp.float32)
    out2 = jax.block_until_ready(apply_poisson_noise(x2, noise2))
    ref2 = _reference(x2, noise2)
    assert out2.shape == x2.shape and out2.dtype == x2.dtype
    assert jnp.allclose(out2, ref2, atol=1e-5, rtol=1e-5)

    print("KERNEL_OK")
</pallas_src>

<mosaic_0001>
module attributes {stable_mosaic.version = 11 : i64} {
  func.func @_poisson_noise_kernel(%arg0: i32, %arg1: i32, %arg2: memref<1x4x256xf32, #tpu.memory_space<vmem>>, %arg3: memref<1x1x256xf32, #tpu.memory_space<vmem>>, %arg4: memref<1x4x256xf32, #tpu.memory_space<vmem>>) attributes {dimension_semantics = [#tpu.dimension_semantics<parallel>, #tpu.dimension_semantics<parallel>], iteration_bounds = array<i64: 2, 1>, scalar_prefetch = 0 : i64, scratch_operands = 0 : i64, tpu.core_type = #tpu.core_type<tc>, window_params = [{transform_indices = @transform_0, window_bounds = array<i64: 1, 4, 256>}, {transform_indices = @transform_1, window_bounds = array<i64: 1, 1, 256>}, {transform_indices = @transform_2, window_bounds = array<i64: 1, 4, 256>}]} {
    %c0 = arith.constant 0 : index
    %c0_0 = arith.constant 0 : index
    %c0_1 = arith.constant 0 : index
    %0 = vector.load %arg2[%c0, %c0_0, %c0_1] : memref<1x4x256xf32, #tpu.memory_space<vmem>>, vector<1x4x256xf32>
    %c0_2 = arith.constant 0 : index
    %c0_3 = arith.constant 0 : index
    %c0_4 = arith.constant 0 : index
    %1 = vector.load %arg3[%c0_2, %c0_3, %c0_4] : memref<1x1x256xf32, #tpu.memory_space<vmem>>, vector<1x1x256xf32>
    %2 = math.sqrt %0 : vector<1x4x256xf32>
    %3 = vector.broadcast %1 : vector<1x1x256xf32> to vector<1x4x256xf32>
    %4 = arith.mulf %2, %3 : vector<1x4x256xf32>
    %5 = arith.addf %0, %4 : vector<1x4x256xf32>
    %c0_5 = arith.constant 0 : index
    %c0_6 = arith.constant 0 : index
    %c0_7 = arith.constant 0 : index
    %6 = vector.load %arg4[%c0_5, %c0_6, %c0_7] : memref<1x4x256xf32, #tpu.memory_space<vmem>>, vector<1x4x256xf32>
    tpu.vector_store %arg4[%c0_5, %c0_6, %c0_7], %5 {strides = array<i32>} : memref<1x4x256xf32, #tpu.memory_space<vmem>>, vector<1x4x256xf32>,
    return
  }
  func.func @transform_0(%arg0: i32, %arg1: i32) -> (i32, i32, i32) {
    %c0_i32 = arith.constant 0 : i32
    %c0_i32_0 = arith.constant 0 : i32
    return %arg0, %c0_i32, %arg1 : i32, i32, i32
  }
  func.func @transform_1(%arg0: i32, %arg1: i32) -> (i32, i32, i32) {
    %c0_i32 = arith.constant 0 : i32
    %c0_i32_0 = arith.constant 0 : i32
    return %arg0, %c0_i32, %arg1 : i32, i32, i32
  }
  func.func @transform_2(%arg0: i32, %arg1: i32) -> (i32, i32, i32) {
    %c0_i32 = arith.constant 0 : i32
    %c0_i32_0 = arith.constant 0 : i32
    return %arg0, %c0_i32, %arg1 : i32, i32, i32
  }
}

</mosaic_0001>

<bundles_post_ra>
// kernel: tpu_custom_call.1
= control target key start
LH: loop header
LB: loop body
LE: loop exit
PB: predicated region body
PF: predicated region fallthrough
CT: control target
= control target key end

     0   :  { %7 = vsyncpa [#allocation3], 0  ;;  %s845_s0 = inlined_call_operand.hbm [shape: f32[2,4,256], index: 0, kind: input, shape index: {}]   ;;  %s846_s1 = inlined_call_operand.hbm [shape: f32[2,1,256], index: 1, kind: input, shape index: {}]   ;;  %s847_s2 = inlined_call_operand.hbm [shape: f32[2,4,256], index: 2, kind: output, shape index: {}]  }
   0x1   :  { %9 = vsyncpa [#allocation3 + $0x1], 0 }
   0x2   :  { %10 = vsyncpa [#allocation6], 0 }
   0x3   :  { %12 = vsyncpa [#allocation6 + $0x1], 0 }
   0x4   :  { %13 = vsyncpa [#allocation4], 0 }
   0x5   :  { %15 = vsyncpa [#allocation4 + $0x1], 0  ;;  %s630_s9 = smov 0   ;;  %s632_s10 = smov 0  }
   0x6   :  { %s634_s11 = smov 0   ;;  %s636_s12 = smov 0  }
   0x7   :  { %s638_s13 = smov 0   ;;  %s640_s14 = smov 0  }
   0x8 LB: > { %s373_s15 = sadd.s32 4294967295, %s610_s14   ;;  %s374_s16 = sadd.s32 4294967294, %s610_s14   ;;  %s610_s14 = sphi %s640_s14, %s21_s14   ;;  %s606_s13 = sphi %s638_s13, %s867_s13   ;;  %s602_s12 = sphi %s636_s12, %s866_s12   ;;  %s598_s11 = sphi %s634_s11, %s865_s11   ;;  %s594_s10 = sphi %s632_s10, %s864_s10   ;;  %s590_s9 = sphi %s630_s9, %s863_s9  }
   0x9   : > { %s33_s17 = sadd.s32 1, %s606_s13  ;;  %s42_s18 = sadd.s32 1, %s598_s11 }
   0xa   : > { %p35_p0 = scmp.ge.s32.totalorder %s33_s17, 2  ;;  %p49_p1 = scmp.ne.s32.totalorder %s598_s11, %s594_s10 }
   0xb   : > { %p50_p2 = scmp.eq.s32.totalorder %s610_s14, 0  ;;  %p55_p3 = scmp.ne.s32.totalorder %s594_s10, %s590_s9 }
   0xc   : > { %s869_s17 = smov (%p35_p0, %s33_s17), 0  ;;  %p56_p5 = scmp.eq.s32.totalorder %s373_s15, 0 }
   0xd   : > { %p671_p4 = por %p50_p2, %p49_p1  ;;  %s37_s20 = ssub.s32 %s606_s13, %s869_s17 }
   0xe   : > { %p109_p6 = scmp.eq.s32.totalorder %s373_s15, 1  ;;  %p40_p7 = scmp.eq.s32.totalorder %s37_s20, 0 }
   0xf   : > { %p677_p8 = por %p56_p5, %p55_p3  ;;  %p115_p10 = scmp.eq.s32.totalorder %s374_s16, 1 }
  0x10   : > { %p681_p9 = por %p109_p6, %p49_p1  ;;  %p412_p13 = scmp.lt.s32.totalorder %s610_s14, 2 }
  0x11   : > { %s851_s21 = scalar_select %p677_p8, 1, 0 }
  0x12   : > { %s852_s22 = scalar_select %p681_p9, 1, 0 }
  0x13   : > { %s686_s23 = scalar_select %p40_p7, %s598_s11, %s42_s18  }
  0x14   : > { %p688_p11 = por %p115_p10, %p55_p3  ;;  %s695_s25 = sand.u32 1, %s598_s11  }
  0x15   : > { %s377_s26 = sshll.u32 %s695_s25, 3  ;;  %s392_s27 = sshll.u32 %s606_s13, 7 }
  0x16   : > { %s853_s24 = scalar_select %p688_p11, 1, 0 }
  0x17   : > { %s702_s30 = scalar_lea.hbm %s845_s0, %s392_s27  ;;  %s139_s3 = scalar_lea.vmem [#allocation2], %s377_s26 }
  0x18   : > { %s149_s4 = sshll.u32 %s139_s3, 4  ;;  %p708_p0 = pnand %p412_p13, %p671_p4  ;;  %s704_s4 = int_to_ptr.vmem [resolvable:$true] %s149_s4 }
  0x19   : > { %s136_s6 = scalar_lea.sflag [#allocation3], %s695_s25  ;;  %s464_s7 = scalar_lea.hbm %s702_s30, 128 }
  0x1a   : > { %p465_p3 = scmp.ne.s32.totalorder %s702_s30, %s464_s7  ;;  %p466_p5 = pneg %p708_p0 }
  0x1b   : > { %s469_s16 = scalar_lea.hbm %s845_s0, 256  ;;  %p470_p4 = scmp.lt.u32.totalorder %s702_s30, %s845_s0 }
  0x1c   : > { %p467_p6 = pnand %p466_p5, %p465_p3  ;;  %p471_p10 = scmp.lt.u32.totalorder %s469_s16, %s464_s7 }
  0x1d   : > { %p473_p12 = scmp.lt.u32.totalorder %s464_s7, %s702_s30 }
  0x1e   : > { %p468_p7 = pneg %p467_p6  ;;  %p472_p13 = por %p471_p10, %p470_p4 }
  0x20   : > { %p474_p1 = por %p473_p12, %p472_p13 }
  0x22   : > { %p475_p2 = pnand %p474_p1, %p468_p7 }
  0x24   : > { %478 = shalt.err (!%p475_p2)
}
  0x25   : > { %s479_s20 = scalar_lea.vmem %s704_s4, 128  ;;  %s612_s26 = smov [#allocation2]  }
  0x26   : > { %p480_p3 = scmp.ne.s32.totalorder %s704_s4, %s479_s20  ;;  %s484_s27 = sshll.u32 %s612_s26, 4  ;;  %s485_s27 = int_to_ptr.vmem [resolvable:$false] %s484_s27 }
  0x27   : > { %s486_s28 = scalar_lea.vmem %s485_s27, 256  ;;  %p487_p9 = scmp.lt.s32.totalorder %s704_s4, %s485_s27 }
  0x28   : > { %p482_p6 = pnand %p480_p3, %p466_p5  ;;  %p488_p4 = scmp.lt.s32.totalorder %s486_s28, %s479_s20 }
  0x2a   : > { %p483_p11 = pneg %p482_p6  ;;  %p489_p10 = por %p488_p4, %p487_p9 }
  0x2c   : > { %p490_p12 = pnand %p489_p10, %p483_p11 }
  0x2e   : > { %493 = shalt.err (!%p490_p12)
}
  0x2f   : > { %404 = dma.hbm_to_vmem [thread:$0]  (!%p708_p0), %s702_s30, 128, %s704_s4, %s136_s6  }
  0x30   : > { %p855_p1 = scmp.lt.s32.totalorder %s610_s14, 3  ;;  %p856_p2 = scmp.ge.s32.totalorder %s610_s14, 1 }
  0x31   : > { %s380_s3 = sshll.u32 %s695_s25, 1  ;;  %s393_s7 = sshll.u32 %s606_s13, 5 }
  0x32   : > { %p744_p7 = pnand %p856_p2, %p855_p1  ;;  %s753_s16 = scalar_lea.hbm %s846_s1, %s393_s7 }
  0x33   : > { %s160_s18 = scalar_lea.vmem [#allocation5], %s380_s3  ;;  %s157_s30 = scalar_lea.sflag [#allocation6], %s695_s25 }
  0x34   : > { %s857_s29 = scalar_select %p744_p7, 1, 0 }
  0x35   : > { %s170_s19 = sshll.u32 %s160_s18, 4  ;;  %s494_s4 = scalar_lea.hbm %s753_s16, 32  ;;  %s171_s19 = int_to_ptr.vmem [resolvable:$true] %s170_s19 }
  0x36   : > { %p495_p9 = scmp.ne.s32.totalorder %s753_s16, %s494_s4  ;;  %s499_s26 = scalar_lea.hbm %s846_s1, 64 }
  0x37   : > { %p500_p3 = scmp.lt.u32.totalorder %s753_s16, %s846_s1  ;;  %p501_p6 = scmp.lt.u32.totalorder %s499_s26, %s494_s4 }
  0x38   : > { %p497_p11 = pnand %p495_p9, %p466_p5  ;;  %p503_p10 = scmp.lt.u32.totalorder %s494_s4, %s753_s16 }
  0x39   : > { %p502_p4 = por %p501_p6, %p500_p3 }
  0x3a   : > { %p498_p13 = pneg %p497_p11 }
  0x3b   : > { %p504_p12 = por %p503_p10, %p502_p4 }
  0x3d   : > { %p505_p1 = pnand %p504_p12, %p498_p13 }
  0x3f   : > { %508 = shalt.err (!%p505_p1)
}
  0x40   : > { %s509_s25 = scalar_lea.vmem %s171_s19, 32  ;;  %s613_s3 = smov [#allocation5]  }
  0x41   : > { %p510_p2 = scmp.ne.s32.totalorder %s171_s19, %s509_s25  ;;  %s514_s7 = sshll.u32 %s613_s3, 4  ;;  %s515_s7 = int_to_ptr.vmem [resolvable:$false] %s514_s7 }
  0x42   : > { %s516_s8 = scalar_lea.vmem %s515_s7, 64  ;;  %p517_p8 = scmp.lt.s32.totalorder %s171_s19, %s515_s7 }
  0x43   : > { %p512_p9 = pnand %p510_p2, %p466_p5  ;;  %p518_p7 = scmp.lt.s32.totalorder %s516_s8, %s509_s25 }
  0x45   : > { %p513_p11 = pneg %p512_p9  ;;  %p519_p3 = por %p518_p7, %p517_p8 }
  0x47   : > { %p520_p6 = pnand %p519_p3, %p513_p11 }
  0x49   : > { %523 = shalt.err (!%p520_p6)
}
  0x4a   : > { %407 = dma.hbm_to_vmem [thread:$0]  (!%p708_p0), %s753_s16, 32, %s171_s19, %s157_s30  }
  0x4b   : > { %p858_p13 = scmp.ne.s32.totalorder %s857_s29, 0 }
  0x4c   : > { %s778_s15 = sand.u32 (!%p858_p13), 1, %s594_s10   ;;  %p859_p5 = scmp.ne.s32.totalorder (!%p858_p13), %s851_s21, 0 }
  0x4d   : > { %179 = sbr.rel (%p858_p13) target bundleno = 122 (0x7a), region = 28  ;;  %s384_s18 = sshll.u32 (!%p858_p13), %s778_s15, 3 }
  0x4e   : > { %s182_s4 = scalar_lea.sflag (!%p858_p13), [#allocation3], %s778_s15  ;;  %s185_s6 = scalar_lea.vmem (!%p858_p13), [#allocation2], %s384_s18 }
  0x54   : > { %577 = dma.done.wait (%p859_p5), %s182_s4, 128  }
  0x55   : > { %579 = vsyncadd (%p859_p5), %s182_s4, 4294967168  ;;  %s385_s5 = sshll.u32 %s778_s15, 1  ;;  %s191_s29 = scalar_lea.sflag [#allocation6], %s778_s15 }
  0x56   : > { %s194_s16 = scalar_lea.vmem [#allocation5], %s385_s5 }
  0x57   : > { %581 = dma.done.wait (%p859_p5), %s191_s29, 32  }
  0x58   : > { %583 = vsyncadd (%p859_p5), %s191_s29, 4294967264  ;;  %v233_v0 = vlaneseq  ;;  %v223_v1 = vld [vmem:[%s185_s6] sm:$0xff]  ;;  %v224_v5 = vld [vmem:[%s194_s16] sm:$0x3]  ;;  %s219_s21 = scalar_lea.vmem [#allocation7], %s384_s18  ;;  %s394_s30 = sshll.u32 %s602_s12, 7 }
  0x59   : > { %462 = vrsqrt.f32 %v223_v1  ;;  %vm227_vm0 = vcmp.eq.f32.partialorder %v223_v1, inf  ;;  %v230_v9 = vand.u32 2147483648, %v223_v1  ;;  %vm229_vm1 = vcmp.eq.f32.partialorder %v223_v1, 0.0  ;;  %s263_s19 = sshll.u32 %s219_s21, 4  ;;  %s798_s27 = scalar_lea.hbm %s847_s2, %s394_s30  ;;  %s793_s19 = int_to_ptr.vmem [resolvable:$true] %s263_s19 }
  0x5a   : > { %v234_v2 = vshrl.u32 %v233_v0, 7  ;;  %s247_s28 = scalar_lea.sflag [#allocation4], %s778_s15  ;;  %s524_s25 = scalar_lea.vmem %s793_s19, 128 }
  0x5b   : > { %p525_p8 = scmp.ne.s32.totalorder %s793_s19, %s524_s25  ;;  %p860_p0 = scmp.ne.s32.totalorder %s852_s22, 0 }
  0x5c   : > { %v235_v3 = vsub.s32 0, %v234_v2  ;;  %v239_v4 = vsub.s32 1, %v234_v2  ;;  %s614_s12 = smov [#allocation7]  }
  0x5d   : > { %p526_p7 = pnand %p525_p8, %p860_p0  ;;  %s528_s3 = sshll.u32 %s614_s12, 4  ;;  %s529_s3 = int_to_ptr.vmem [resolvable:$false] %s528_s3 }
  0x5e   : > { %v236_v6 = vrot.slane %v224_v5, %v235_v3  ;;  %v240_v7 = vrot.slane %v224_v5, %v239_v4  ;;  %s530_s7 = scalar_lea.vmem %s529_s3, 256  ;;  %p531_p10 = scmp.lt.s32.totalorder %s793_s19, %s529_s3 }
  0x5f   : > { %p527_p4 = pneg %p526_p7  ;;  %p532_p12 = scmp.lt.s32.totalorder %s530_s7, %s524_s25 }
  0x60   : > { %v241_v11 = vcombine.low %v236_v6, %v240_v7 }
  0x61   : > { %p533_p1 = por %p532_p12, %p531_p10 }
  0x63   : > { %v463_v8 = vpop.eup %462  ;;  %p534_p2 = pnand %p533_p1, %p527_p4 }
  0x64   : > { %v226_v10 = vmul.f32 %v463_v8, %v223_v1 }
  0x66   : > { %v228_v12 = vsel %vm227_vm0, %v223_v1, %v226_v10 }
  0x67   : > { %v231_v13 = vsel %vm229_vm1, %v230_v9, %v228_v12 }
  0x68   : > { %v243_v14 = vmul.f32 %v241_v11, %v231_v13 }
  0x6a   : > { %v244_v15 = vadd.f32 %v243_v14, %v223_v1 }
  0x6c   : > { %245 = vst [vmem:[%s219_s21] sm:$0xff] %v244_v15 }
  0x6d   : > { %537 = shalt.err (!%p534_p2)
}
  0x6e   : > { %s538_s8 = scalar_lea.hbm %s798_s27, 128  ;;  %s542_s4 = scalar_lea.hbm %s847_s2, 256 }
  0x6f   : > { %p539_p9 = scmp.ne.s32.totalorder %s798_s27, %s538_s8  ;;  %p543_p6 = scmp.lt.u32.totalorder %s798_s27, %s847_s2 }
  0x70   : > { %p544_p13 = scmp.lt.u32.totalorder %s542_s4, %s538_s8  ;;  %p546_p8 = scmp.lt.u32.totalorder %s538_s8, %s798_s27 }
  0x71   : > { %p540_p11 = pnand %p539_p9, %p860_p0 }
  0x72   : > { %p545_p5 = por %p544_p13, %p543_p6 }
  0x73   : > { %p541_p3 = pneg %p540_p11 }
  0x74   : > { %p547_p7 = por %p546_p8, %p545_p5 }
  0x76   : > { %p548_p4 = pnand %p547_p7, %p541_p3 }
  0x78   : > { %551 = shalt.err (!%p548_p4)
}
  0x79   : > { %399 = dma.vmem_to_hbm [thread:$0]  (%p860_p0), %s793_s19, 128, %s798_s27, %s247_s28  }
  0x7a PF: > { %s275_s29 = sand.u32 1, %s590_s9   ;;  %p861_p10 = scmp.ne.s32.totalorder %s853_s24, 0 }
  0x7b   : > { %p862_p12 = scmp.ge.s32.totalorder %s610_s14, 2  ;;  %s276_s16 = scalar_lea.sflag [#allocation4], %s275_s29 }
  0x7d   : > { %p409_p1 = pnand %p862_p12, %p861_p10 }
  0x7f   : > { %585 = dma.done.wait (!%p409_p1), %s276_s16, 128  }
  0x80   : > { %587 = vsyncadd (!%p409_p1), %s276_s16, 4294967168  ;;  %s21_s14 = sadd.s32 1, %s610_s14   ;;  %s863_s9 = smov %s594_s10 }
  0x81   : > { %p18_p2 = scmp.ge.s32.totalorder %s21_s14, 4   ;;  %s864_s10 = smov %s598_s11 }
  0x82   : > { %s865_s11 = smov %s686_s23  ;;  %s866_s12 = smov %s606_s13 }
  0x83   : > { %s867_s13 = smov %s869_s17  ;;  %20 = sbr.rel (!%p18_p2) target bundleno = 8 (0x8), region = 86 }
  0x8a   :  { %281 = vsyncpa [#allocation3], 1 }
  0x8b   :  { %283 = vsyncpa [#allocation3 + $0x1], 1 }
  0x8c   :  { %284 = vsyncpa [#allocation6], 1 }
  0x8d   :  { %286 = vsyncpa [#allocation6 + $0x1], 1 }
  0x8e   :  { %287 = vsyncpa [#allocation4], 1 }
  0x8f   :  { %289 = vsyncpa [#allocation4 + $0x1], 1 }

</bundles_post_ra>
